<compile_context>
chip_gen: v7x
topology: tpu7x:2x2x1
jax: 0.10.0
libtpu: 0.0.40
codegen_flags: <defaults>
</compile_context>

<pallas_src>
import functools

import jax
import jax.numpy as jnp
from jax.experimental import pallas as pl
from jax.experimental.pallas import tpu as pltpu


def _round_up(x: int, m: int) -> int:
    return ((x + m - 1) // m) * m


def _unembed_kernel(x_ref, w_ref, b_ref, o_ref):
    """Single-shot (no K tiling) matmul with fused bias add.

    x_ref: (tm, K)  activations (compute dtype, e.g. bf16)
    w_ref: (K, tn)  unembedding column block (compute dtype)
    b_ref: (1, tn)  bias (f32), broadcast over the tm rows
    o_ref: (tm, tn) output tile (activation dtype)
    """
    o_ref[...] = (
        jnp.dot(x_ref[...], w_ref[...], preferred_element_type=jnp.float32)
        + b_ref[...]
    ).astype(o_ref.dtype)


@functools.partial(jax.jit, static_argnames=("tm", "tn", "compute_dtype"))
def unembed(x, w_u, b_u, *, tm=512, tn=1024, compute_dtype=jnp.bfloat16):
    """x: [batch, posn, d_model], w_u: [d_model, d_vocab], b_u: [d_vocab]
    -> logits: [batch, posn, d_vocab] (same dtype as x)."""
    batch, posn, d_model = x.shape
    d_model_w, d_vocab = w_u.shape
    assert d_model == d_model_w

    out_dtype = x.dtype
    M = batch * posn
    K = d_model

    # Flatten, cast to the (narrow) compute dtype; bias stays f32 and is added
    # onto the f32 MXU accumulator inside the kernel.
    x2d = x.reshape(M, K).astype(compute_dtype)
    w2d = w_u.astype(compute_dtype)
    b2d = b_u.reshape(1, d_vocab).astype(jnp.float32)

    # Effective tile sizes: never larger than the (padded) problem, aligned to
    # the (8, 128) vreg tiling. Pad M / d_vocab so the grid divides evenly.
    tm_eff = min(tm, _round_up(M, 8))
    tn_eff = min(tn, _round_up(d_vocab, 128))
    m_pad = _round_up(M, tm_eff)
    n_pad = _round_up(d_vocab, tn_eff)

    if m_pad != M:
        x2d = jnp.pad(x2d, ((0, m_pad - M), (0, 0)))
    if n_pad != d_vocab:
        w2d = jnp.pad(w2d, ((0, 0), (0, n_pad - d_vocab)))
        b2d = jnp.pad(b2d, ((0, 0), (0, n_pad - d_vocab)))

    # Grid: j (vocab tiles) outer, i (row tiles) inner -> W_U's block index
    # (0, j) is invariant across the inner i sweep, so each W column block is
    # streamed from HBM exactly once. No reduction axis: K is taken whole.
    grid = (n_pad // tn_eff, m_pad // tm_eff)

    cost = pl.CostEstimate(
        flops=2 * m_pad * K * n_pad,
        transcendentals=0,
        bytes_accessed=(
            x2d.size * x2d.dtype.itemsize
            + w2d.size * w2d.dtype.itemsize
            + b2d.size * b2d.dtype.itemsize
            + m_pad * n_pad * jnp.dtype(out_dtype).itemsize
        ),
    )

    out2d = pl.pallas_call(
        _unembed_kernel,
        out_shape=jax.ShapeDtypeStruct((m_pad, n_pad), out_dtype),
        grid_spec=pltpu.PrefetchScalarGridSpec(
            num_scalar_prefetch=0,
            grid=grid,
            in_specs=[
                pl.BlockSpec((tm_eff, K), lambda j, i: (i, 0)),   # x rows, full K
                pl.BlockSpec((K, tn_eff), lambda j, i: (0, j)),   # W_U column block
                pl.BlockSpec((1, tn_eff), lambda j, i: (0, j)),   # bias block
            ],
            out_specs=pl.BlockSpec((tm_eff, tn_eff), lambda j, i: (i, j)),
        ),
        compiler_params=pltpu.CompilerParams(
            dimension_semantics=("parallel", "parallel"),
            # Conservative: fits v7x's 64 MiB VMEM with double-buffered default
            # tiles; can be raised to ~96 MiB on v5e/v6e (128 MiB physical).
            vmem_limit_bytes=48 * 1024 * 1024,
        ),
        cost_estimate=cost,
    )(x2d, w2d, b2d)

    if m_pad != M or n_pad != d_vocab:
        out2d = out2d[:M, :d_vocab]
    return out2d.reshape(batch, posn, d_vocab)


if __name__ == "__main__":
    # Small, deterministic "cfg": d_model=32, d_vocab=128, init_range=0.02.
    batch, posn, d_model, d_vocab = 2, 8, 32, 128
    init_range = 0.02

    key = jax.random.PRNGKey(0)
    kx, kw = jax.random.split(key)

    normalized_resid_final = jax.random.normal(
        kx, (batch, posn, d_model), dtype=jnp.float32
    )
    # Parameters initialized deterministically, matching the module's __init__:
    # W_U ~ N(0, init_range), b_U = zeros (non-trainable in the reference).
    W_U = init_range * jax.random.normal(kw, (d_model, d_vocab), dtype=jnp.float32)
    b_U = jnp.zeros((d_vocab,), dtype=jnp.float32)

    logits = unembed(normalized_resid_final, W_U, b_U)
    jax.block_until_ready(logits)

    # Reference check: same bf16 inputs, f32 accumulation (matches kernel's
    # compute precision), bias added in f32.
    ref = (
        jnp.einsum(
            "bpd,dv->bpv",
            normalized_resid_final.astype(jnp.bfloat16),
            W_U.astype(jnp.bfloat16),
            preferred_element_type=jnp.float32,
        )
        + b_U
    )
    assert logits.shape == (batch, posn, d_vocab)
    assert logits.dtype == normalized_resid_final.dtype
    assert jnp.allclose(logits, ref, atol=1e-3, rtol=1e-2)

    print("KERNEL_OK")
</pallas_src>

<mosaic_0001>
module attributes {stable_mosaic.version = 11 : i64} {
  func.func @_unembed_kernel(%arg0: i32, %arg1: i32, %arg2: memref<16x32xbf16, #tpu.memory_space<vmem>>, %arg3: memref<32x128xbf16, #tpu.memory_space<vmem>>, %arg4: memref<1x128xf32, #tpu.memory_space<vmem>>, %arg5: memref<16x128xf32, #tpu.memory_space<vmem>>) attributes {dimension_semantics = [#tpu.dimension_semantics<parallel>, #tpu.dimension_semantics<parallel>], iteration_bounds = array<i64: 1, 1>, scalar_prefetch = 0 : i64, scratch_operands = 0 : i64, tpu.core_type = #tpu.core_type<tc>, window_params = [{transform_indices = @transform_0, window_bounds = array<i64: 16, 32>}, {transform_indices = @transform_1, window_bounds = array<i64: 32, 128>}, {transform_indices = @transform_2, window_bounds = array<i64: 1, 128>}, {transform_indices = @transform_3, window_bounds = array<i64: 16, 128>}]} {
    %c0 = arith.constant 0 : index
    %c0_0 = arith.constant 0 : index
    %0 = vector.load %arg2[%c0, %c0_0] : memref<16x32xbf16, #tpu.memory_space<vmem>>, vector<16x32xbf16>
    %c0_1 = arith.constant 0 : index
    %c0_2 = arith.constant 0 : index
    %1 = vector.load %arg3[%c0_1, %c0_2] : memref<32x128xbf16, #tpu.memory_space<vmem>>, vector<32x128xbf16>
    %cst = arith.constant dense<0.000000e+00> : vector<16x128xf32>
    %2 = tpu.matmul %0, %1, %cst {dimension_numbers = #tpu.dot_dimension_numbers<[1], [0], [0], [1], [0, 0, 1, 1], [], []>} : vector<16x32xbf16>, vector<32x128xbf16>, vector<16x128xf32> -> vector<16x128xf32>
    %c0_3 = arith.constant 0 : index
    %c0_4 = arith.constant 0 : index
    %3 = vector.load %arg4[%c0_3, %c0_4] : memref<1x128xf32, #tpu.memory_space<vmem>>, vector<1x128xf32>
    %4 = vector.broadcast %3 : vector<1x128xf32> to vector<16x128xf32>
    %5 = arith.addf %2, %4 : vector<16x128xf32>
    %c0_5 = arith.constant 0 : index
    %c0_6 = arith.constant 0 : index
    %6 = vector.load %arg5[%c0_5, %c0_6] : memref<16x128xf32, #tpu.memory_space<vmem>>, vector<16x128xf32>
    tpu.vector_store %arg5[%c0_5, %c0_6], %5 {strides = array<i32>} : memref<16x128xf32, #tpu.memory_space<vmem>>, vector<16x128xf32>,
    return
  }
  func.func @transform_0(%arg0: i32, %arg1: i32) -> (i32, i32) {
    %c0_i32 = arith.constant 0 : i32
    %c0_i32_0 = arith.constant 0 : i32
    return %arg1, %c0_i32 : i32, i32
  }
  func.func @transform_1(%arg0: i32, %arg1: i32) -> (i32, i32) {
    %c0_i32 = arith.constant 0 : i32
    %c0_i32_0 = arith.constant 0 : i32
    return %c0_i32, %arg0 : i32, i32
  }
  func.func @transform_2(%arg0: i32, %arg1: i32) -> (i32, i32) {
    %c0_i32 = arith.constant 0 : i32
    %c0_i32_0 = arith.constant 0 : i32
    return %c0_i32, %arg0 : i32, i32
  }
  func.func @transform_3(%arg0: i32, %arg1: i32) -> (i32, i32) {
    %c0_i32 = arith.constant 0 : i32
    return %arg1, %arg0 : i32, i32
  }
}

</mosaic_0001>

<bundles_post_ra>
// kernel: unembed.1
= control target key start
LH: loop header
LB: loop body
LE: loop exit
PB: predicated region body
PF: predicated region fallthrough
CT: control target
= control target key end

     0   :  { %v157_v1 = vmov 0.0   ;;  %vm158_vm0 = vmmov 0   ;;  %s206_s0 = inlined_call_operand.vmem [shape: bf16[16,32], index: 0, kind: input, shape index: {}]   ;;  %s207_s1 = inlined_call_operand.vmem [shape: bf16[32,128], index: 1, kind: input, shape index: {}]   ;;  %s208_s2 = inlined_call_operand.vmem [shape: f32[1,128], index: 2, kind: input, shape index: {}]   ;;  %s209_s3 = inlined_call_operand.hbm [shape: f32[16,128], index: 3, kind: output, shape index: {}]  }
   0x1   :  { %v130_v0 = vld [vmem:[%s207_s1] sm:$0xff]   ;;  %117 = vmatprep.subr.bf16.mxu0 %v157_v1  ;;  %v131_v2 = vld [vmem:[%s207_s1 + $0x8] sm:$0xff]   ;;  %121 = vmatprep.mubr.msk.bf16.mxu0 %vm158_vm0, %v157_v1 }
   0x2   :  { %118 = vmatpush3.bf16.msra.mxu0 %v130_v0 }
   0x3   :  { %119 = vmatprep.subr.bf16.mxu0 %v157_v1 }
   0x4   :  { %8 = vsyncpa [#allocation3], 0  ;;  %v132_v3 = vld [vmem:[%s206_s0] sm:$0xff]   ;;  %vm46_vm1 = vcmask 261120   ;;  %s159_s20 = smov [#allocation2]  }
   0x5   :  { %v109_v4 = vld [vmem:[%s208_s2] ss:$0 sm:$0xff]  ;;  %s98_s21 = sshll.u32 %s159_s20, 4  ;;  %s99_s21 = int_to_ptr.vmem [resolvable:$true] %s98_s21 }
   0x6   :  { %120 = vmatpush3.bf16.msra.mxu0 %v131_v2  ;;  %s133_s1 = scalar_lea.vmem %s99_s21, 256  ;;  %p138_p1 = scmp.lt.s32.totalorder %s99_s21, %s99_s21 }
   0x7   :  { %p134_p0 = scmp.ne.s32.totalorder %s99_s21, %s133_s1  ;;  %p139_p2 = scmp.lt.s32.totalorder %s133_s1, %s133_s1 }
   0x9   :  { %122 = vmatmul.mubr.msk.bf16.vlgmr.msra.gmra.mrb[0].mxu0 %vm46_vm1, %v132_v3  ;;  %p140_p3 = por %p139_p2, %p138_p1 }
   0xb   :  { %p141_p4 = pnand %p140_p3, %p134_p0 }
  0xdc   :  { %v84_v5 = vpop.f32.mrb[0].mxu0 }
  0xdd   :  { %v85_v6 = vadd.f32 %v109_v4, %v84_v5  ;;  %v123_v7 = vpop.f32.mrb[1].mxu0 }
  0xde   :  { %v87_v8 = vpop.f32.mrb[2].mxu0 }
  0xdf   :  { %91 = vst [vmem:[#allocation2] sm:$0xff] %v85_v6  ;;  %v88_v9 = vadd.f32 %v109_v4, %v87_v8  ;;  %v124_v10 = vpop.f32.mrb[3].mxu0 }
  0xe1   :  { %92 = vst [vmem:[#allocation2 + $0x8] sm:$0xff] %v88_v9 }
  0xe2   :  { %144 = shalt.err (!%p141_p4)
}
  0xe3   :  { %s145_s22 = scalar_lea.hbm %s209_s3, 256 }
  0xe4   :  { %p146_p5 = scmp.ne.s32.totalorder %s209_s3, %s145_s22  ;;  %p149_p6 = scmp.lt.u32.totalorder %s145_s22, %s209_s3 }
  0xe6   :  { %p151_p7 = pnand %p149_p6, %p146_p5 }
  0xe8   :  { %154 = shalt.err (!%p151_p7)
}
  0xe9   :  { %s160_s27 = smov 128   ;;  %s161_s28 = smov 8  }
  0xea   :  { %104 = dma.vmem_to_hbm [thread:$0]  %s99_s21, 256, %s209_s3, [#allocation3], %s160_s27, %s160_s27, %s161_s28  }
  0xeb   :  { %155 = dma.done.wait [#allocation3], 256  }
  0xec   :  { %156 = vsyncadd [#allocation3], 4294967040 }
  0xed   :  { %108 = vsyncpa [#allocation3], 1 }

</bundles_post_ra>
